<compile_context>
chip_gen: v7x
topology: tpu7x:2x2x1
jax: 0.10.0
libtpu: 0.0.40
codegen_flags: <defaults>
</compile_context>

<pallas_src>
import jax
import jax.numpy as jnp
import numpy as np
from jax.experimental import pallas as pl
from jax.experimental.pallas import tpu as pltpu


def cnn_seq2vec_kernel(x_ref, mask_ref, wcat_ref, bcat_ref, wproj_t_ref,
                       bproj_ref, comb_ref, slab_ref):
    x = x_ref[...]                       # (Bt, T, D) f32
    m = mask_ref[...]                    # (Bt, T)    f32
    Bt, T, D = x.shape
    LD = wcat_ref.shape[1]               # L * D

    # Mask padding tokens once per tile (mask broadcast over embedding dim).
    xm = x * m[:, :, None]

    # Two taps of the width-2 filter, fused along the contraction axis -> K=2D.
    xcat = jnp.concatenate([xm[:, :T - 1, :], xm[:, 1:, :]], axis=-1)  # (Bt,T-1,2D)
    xcat2d = xcat.reshape(Bt * (T - 1), 2 * D)                         # no batch dim on the dot

    # One MXU matmul for all taps and all layers.
    wcat = wcat_ref[...]                                               # (2D, L*D)
    conv = jnp.dot(xcat2d.astype(wcat.dtype), wcat,
                   preferred_element_type=jnp.float32) + bcat_ref[...]  # (Bt*(T-1), L*D)
    act = jnp.maximum(conv, 0.0)                                       # ReLU (f32)

    # MaxPool1d over time -> (Bt, L*D). This IS the concatenated "combined".
    pooled = jnp.max(act.reshape(Bt, T - 1, LD), axis=1)

    # Single lane-dense store of all layer representations.
    slab_ref[...] = pooled

    # Projection to (Bt, D).
    wp = wproj_t_ref[...]                                              # (L*D, D)
    comb_ref[...] = (jnp.dot(pooled.astype(wp.dtype), wp,
                             preferred_element_type=jnp.float32)
                     + bproj_ref[...])


def cnn_sequence_to_vector(x, mask, wconv, bconv, wproj_t, bproj, *,
                           use_bf16=False):
    """x: (B,T,D) f32; mask: (B,T) f32; wconv: (L,2,D,D); bconv: (L,1,D);
    wproj_t: (L*D, D) (= torch Linear.weight.T); bproj: (1, D)."""
    B, T, D = x.shape
    L = wconv.shape[0]
    LD = L * D

    # Host-side (XLA) weight fusion:
    #   wcat[tap*D + din, l*D + dout] = wconv[l, tap, din, dout]
    wcat = jnp.transpose(wconv, (1, 2, 0, 3)).reshape(2 * D, LD)       # (2D, L*D)
    bcat = bconv.reshape(1, LD)                                        # (1, L*D)

    if use_bf16:
        # bf16 MXU operands, f32 accumulation (v6e/v7x throughput, half the traffic).
        wcat = wcat.astype(jnp.bfloat16)
        wproj_t = wproj_t.astype(jnp.bfloat16)

    # Batch tile: whole batch when small; otherwise 512 rows (8-aligned,
    # comfortably inside VMEM on v5e/v6e/v7x for this tiny per-row footprint).
    Bt = B if B <= 512 else 512
    grid = (pl.cdiv(B, Bt),)

    comb, slab = pl.pallas_call(
        cnn_seq2vec_kernel,
        grid=grid,
        out_shape=(jax.ShapeDtypeStruct((B, D), jnp.float32),
                   jax.ShapeDtypeStruct((B, LD), jnp.float32)),
        in_specs=[
            pl.BlockSpec((Bt, T, D), lambda i: (i, 0, 0)),   # x: batch-tiled
            pl.BlockSpec((Bt, T), lambda i: (i, 0)),         # mask: batch-tiled
            pl.BlockSpec((2 * D, LD), lambda i: (0, 0)),     # fused conv weight (VMEM-resident)
            pl.BlockSpec((1, LD), lambda i: (0, 0)),         # fused conv bias
            pl.BlockSpec((LD, D), lambda i: (0, 0)),         # projection weight (pre-transposed)
            pl.BlockSpec((1, D), lambda i: (0, 0)),          # projection bias
        ],
        out_specs=(pl.BlockSpec((Bt, D), lambda i: (i, 0)),
                   pl.BlockSpec((Bt, LD), lambda i: (i, 0))),
        compiler_params=pltpu.CompilerParams(
            dimension_semantics=("parallel",)),
    )(x, mask, wcat, bcat, wproj_t, bproj)

    # layer_representations: (L, B, D), matching torch.stack(reps, 0).
    layer_reps = jnp.transpose(slab.reshape(B, L, D), (1, 0, 2))
    return {'combined_vector': comb, 'layer_representations': layer_reps}


def reference(x, mask, wconv, bconv, wproj_t, bproj):
    """Pure-JAX reference replicating the PyTorch forward (per-layer form)."""
    xm = x * mask[:, :, None]
    x0, x1 = xm[:, :-1, :], xm[:, 1:, :]
    reps = []
    for l in range(wconv.shape[0]):
        conv = (jnp.einsum('btd,de->bte', x0, wconv[l, 0])
                + jnp.einsum('btd,de->bte', x1, wconv[l, 1]) + bconv[l])
        reps.append(jnp.max(jnp.maximum(conv, 0.0), axis=1))
    combined = jnp.concatenate(reps, axis=1)
    return combined @ wproj_t + bproj, jnp.stack(reps, axis=0)


if __name__ == "__main__":
    B, T, D, L = 2, 8, 32, 3   # batch, max_tokens, embedding_dim, num_layers

    key = jax.random.PRNGKey(0)
    ks = jax.random.split(key, 6)
    x = jax.random.normal(ks[0], (B, T, D), dtype=jnp.float32)
    mask = (jax.random.uniform(ks[1], (B, T)) > 0.25).astype(jnp.float32)

    # Deterministic synthetic parameters (shapes implied by the module's __init__).
    wconv = 0.1 * jax.random.normal(ks[2], (L, 2, D, D), dtype=jnp.float32)
    bconv = 0.1 * jax.random.normal(ks[3], (L, 1, D), dtype=jnp.float32)
    wproj_t = 0.1 * jax.random.normal(ks[4], (L * D, D), dtype=jnp.float32)
    bproj = 0.1 * jax.random.normal(ks[5], (1, D), dtype=jnp.float32)

    out = cnn_sequence_to_vector(x, mask, wconv, bconv, wproj_t, bproj)
    jax.block_until_ready(out)

    ref_comb, ref_reps = reference(x, mask, wconv, bconv, wproj_t, bproj)
    np.testing.assert_allclose(np.asarray(out['combined_vector']),
                               np.asarray(ref_comb), rtol=2e-3, atol=2e-3)
    np.testing.assert_allclose(np.asarray(out['layer_representations']),
                               np.asarray(ref_reps), rtol=2e-3, atol=2e-3)

    print("KERNEL_OK")
</pallas_src>

<mosaic_0001>
module attributes {stable_mosaic.version = 11 : i64} {
  func.func @cnn_seq2vec_kernel(%arg0: i32, %arg1: memref<2x8x32xf32, #tpu.memory_space<vmem>>, %arg2: memref<2x8xf32, #tpu.memory_space<vmem>>, %arg3: memref<64x96xf32, #tpu.memory_space<vmem>>, %arg4: memref<1x96xf32, #tpu.memory_space<vmem>>, %arg5: memref<96x32xf32, #tpu.memory_space<vmem>>, %arg6: memref<1x32xf32, #tpu.memory_space<vmem>>, %arg7: memref<2x32xf32, #tpu.memory_space<vmem>>, %arg8: memref<2x96xf32, #tpu.memory_space<vmem>>) attributes {dimension_semantics = [#tpu.dimension_semantics<parallel>], iteration_bounds = array<i64: 1>, scalar_prefetch = 0 : i64, scratch_operands = 0 : i64, tpu.core_type = #tpu.core_type<tc>, window_params = [{transform_indices = @transform_0, window_bounds = array<i64: 2, 8, 32>}, {transform_indices = @transform_1, window_bounds = array<i64: 2, 8>}, {pipeline_mode = #tpu.pipeline_mode<synchronous>, transform_indices = @transform_2, window_bounds = array<i64: 64, 96>}, {pipeline_mode = #tpu.pipeline_mode<synchronous>, transform_indices = @transform_3, window_bounds = array<i64: 1, 96>}, {pipeline_mode = #tpu.pipeline_mode<synchronous>, transform_indices = @transform_4, window_bounds = array<i64: 96, 32>}, {pipeline_mode = #tpu.pipeline_mode<synchronous>, transform_indices = @transform_5, window_bounds = array<i64: 1, 32>}, {transform_indices = @transform_6, window_bounds = array<i64: 2, 32>}, {transform_indices = @transform_7, window_bounds = array<i64: 2, 96>}]} {
    %c0 = arith.constant 0 : index
    %c0_0 = arith.constant 0 : index
    %c0_1 = arith.constant 0 : index
    %0 = vector.load %arg1[%c0, %c0_0, %c0_1] : memref<2x8x32xf32, #tpu.memory_space<vmem>>, vector<2x8x32xf32>
    %c0_2 = arith.constant 0 : index
    %c0_3 = arith.constant 0 : index
    %1 = vector.load %arg2[%c0_2, %c0_3] : memref<2x8xf32, #tpu.memory_space<vmem>>, vector<2x8xf32>
    %2 = vector.shape_cast %1 : vector<2x8xf32> to vector<2x8x1xf32>
    %3 = vector.broadcast %2 : vector<2x8x1xf32> to vector<2x8x32xf32>
    %4 = arith.mulf %0, %3 : vector<2x8x32xf32>
    %5 = vector.extract_strided_slice %4 {offsets = [0, 0, 0], sizes = [2, 7, 32], strides = [1, 1, 1]} : vector<2x8x32xf32> to vector<2x7x32xf32>
    %6 = vector.extract_strided_slice %4 {offsets = [0, 1, 0], sizes = [2, 7, 32], strides = [1, 1, 1]} : vector<2x8x32xf32> to vector<2x7x32xf32>
    %7 = tpu.concatenate %5, %6 in 2 : vector<2x7x32xf32>, vector<2x7x32xf32> -> vector<2x7x64xf32>
    %8 = vector.shape_cast %7 : vector<2x7x64xf32> to vector<14x64xf32>
    %c0_4 = arith.constant 0 : index
    %c0_5 = arith.constant 0 : index
    %9 = vector.load %arg3[%c0_4, %c0_5] : memref<64x96xf32, #tpu.memory_space<vmem>>, vector<64x96xf32>
    %cst = arith.constant dense<0.000000e+00> : vector<14x96xf32>
    %10 = tpu.matmul %8, %9, %cst {dimension_numbers = #tpu.dot_dimension_numbers<[1], [0], [0], [1], [0, 0, 1, 1], [], []>} : vector<14x64xf32>, vector<64x96xf32>, vector<14x96xf32> -> vector<14x96xf32>
    %c0_6 = arith.constant 0 : index
    %c0_7 = arith.constant 0 : index
    %11 = vector.load %arg4[%c0_6, %c0_7] : memref<1x96xf32, #tpu.memory_space<vmem>>, vector<1x96xf32>
    %12 = vector.broadcast %11 : vector<1x96xf32> to vector<14x96xf32>
    %13 = arith.addf %10, %12 : vector<14x96xf32>
    %cst_8 = arith.constant 0.000000e+00 : f32
    %14 = vector.broadcast %cst_8 : f32 to vector<14x96xf32>
    %15 = arith.maximumf %13, %14 : vector<14x96xf32>
    %16 = vector.shape_cast %15 : vector<14x96xf32> to vector<2x7x96xf32>
    %cst_9 = arith.constant dense<0xFF800000> : vector<2x96xf32>
    %17 = vector.multi_reduction <maximumf>, %16, %cst_9 [1] : vector<2x7x96xf32> to vector<2x96xf32>
    %c0_10 = arith.constant 0 : index
    %c0_11 = arith.constant 0 : index
    %18 = vector.load %arg8[%c0_10, %c0_11] : memref<2x96xf32, #tpu.memory_space<vmem>>, vector<2x96xf32>
    tpu.vector_store %arg8[%c0_10, %c0_11], %17 {strides = array<i32>} : memref<2x96xf32, #tpu.memory_space<vmem>>, vector<2x96xf32>,
    %c0_12 = arith.constant 0 : index
    %c0_13 = arith.constant 0 : index
    %19 = vector.load %arg5[%c0_12, %c0_13] : memref<96x32xf32, #tpu.memory_space<vmem>>, vector<96x32xf32>
    %cst_14 = arith.constant dense<0.000000e+00> : vector<2x32xf32>
    %20 = tpu.matmul %17, %19, %cst_14 {dimension_numbers = #tpu.dot_dimension_numbers<[1], [0], [0], [1], [0, 0, 1, 1], [], []>} : vector<2x96xf32>, vector<96x32xf32>, vector<2x32xf32> -> vector<2x32xf32>
    %c0_15 = arith.constant 0 : index
    %c0_16 = arith.constant 0 : index
    %21 = vector.load %arg6[%c0_15, %c0_16] : memref<1x32xf32, #tpu.memory_space<vmem>>, vector<1x32xf32>
    %22 = vector.broadcast %21 : vector<1x32xf32> to vector<2x32xf32>
    %23 = arith.addf %20, %22 : vector<2x32xf32>
    %c0_17 = arith.constant 0 : index
    %c0_18 = arith.constant 0 : index
    %24 = vector.load %arg7[%c0_17, %c0_18] : memref<2x32xf32, #tpu.memory_space<vmem>>, vector<2x32xf32>
    tpu.vector_store %arg7[%c0_17, %c0_18], %23 {strides = array<i32>} : memref<2x32xf32, #tpu.memory_space<vmem>>, vector<2x32xf32>,
    return
  }
  func.func @transform_0(%arg0: i32) -> (i32, i32, i32) {
    %c0_i32 = arith.constant 0 : i32
    %c0_i32_0 = arith.constant 0 : i32
    %c0_i32_1 = arith.constant 0 : i32
    return %arg0, %c0_i32, %c0_i32_0 : i32, i32, i32
  }
  func.func @transform_1(%arg0: i32) -> (i32, i32) {
    %c0_i32 = arith.constant 0 : i32
    %c0_i32_0 = arith.constant 0 : i32
    return %arg0, %c0_i32 : i32, i32
  }
  func.func @transform_2(%arg0: i32) -> (i32, i32) {
    %c0_i32 = arith.constant 0 : i32
    %c0_i32_0 = arith.constant 0 : i32
    %c0_i32_1 = arith.constant 0 : i32
    return %c0_i32, %c0_i32_0 : i32, i32
  }
  func.func @transform_3(%arg0: i32) -> (i32, i32) {
    %c0_i32 = arith.constant 0 : i32
    %c0_i32_0 = arith.constant 0 : i32
    %c0_i32_1 = arith.constant 0 : i32
    return %c0_i32, %c0_i32_0 : i32, i32
  }
  func.func @transform_4(%arg0: i32) -> (i32, i32) {
    %c0_i32 = arith.constant 0 : i32
    %c0_i32_0 = arith.constant 0 : i32
    %c0_i32_1 = arith.constant 0 : i32
    return %c0_i32, %c0_i32_0 : i32, i32
  }
  func.func @transform_5(%arg0: i32) -> (i32, i32) {
    %c0_i32 = arith.constant 0 : i32
    %c0_i32_0 = arith.constant 0 : i32
    %c0_i32_1 = arith.constant 0 : i32
    return %c0_i32, %c0_i32_0 : i32, i32
  }
  func.func @transform_6(%arg0: i32) -> (i32, i32) {
    %c0_i32 = arith.constant 0 : i32
    %c0_i32_0 = arith.constant 0 : i32
    return %arg0, %c0_i32 : i32, i32
  }
  func.func @transform_7(%arg0: i32) -> (i32, i32) {
    %c0_i32 = arith.constant 0 : i32
    %c0_i32_0 = arith.constant 0 : i32
    return %arg0, %c0_i32 : i32, i32
  }
}

</mosaic_0001>

<bundles_post_ra>
// kernel: tpu_custom_call.1
= control target key start
LH: loop header
LB: loop body
LE: loop exit
PB: predicated region body
PF: predicated region fallthrough
CT: control target
= control target key end

     0   :  { %13 = vsyncpa [#allocation3], 0  ;;  %v30_v0 = vlaneseq  ;;  %s1043_s0 = inlined_call_operand.vmem [shape: f32[2,8,32], index: 0, kind: input, shape index: {}]   ;;  %s1044_s1 = inlined_call_operand.vmem [shape: f32[2,8], index: 1, kind: input, shape index: {}]   ;;  %s1045_s2 = inlined_call_operand.vmem [shape: f32[64,96], index: 2, kind: input, shape index: {}]   ;;  %s1046_s3 = inlined_call_operand.vmem [shape: f32[1,96], index: 3, kind: input, shape index: {}]   ;;  %s1047_s4 = inlined_call_operand.vmem [shape: f32[96,32], index: 4, kind: input, shape index: {}]   ;;  %s1048_s5 = inlined_call_operand.vmem [shape: f32[1,32], index: 5, kind: input, shape index: {}]   ;;  %s1049_s6 = inlined_call_operand.hbm [shape: f32[2,32], index: 6, kind: output, shape index: {0}]   ;;  %s1050_s7 = inlined_call_operand.hbm [shape: f32[2,96], index: 7, kind: output, shape index: {1}]  }
   0x1   :  { %14 = vsyncpa [#allocation5], 0  ;;  %v29_v2 = vld [vmem:[%s1044_s1] sm:$0x3]  ;;  %v158_v9 = vld [vmem:[%s1045_s2 + $0x8] sm:$0xff]  ;;  %s848_s14 = smov 32  }
   0x2   :  { %v31_v1 = vshrl.u32 %v30_v0, 7  ;;  %v27_v7 = vld [vmem:[%s1043_s0] sm:$0xff]  ;;  %v28_v13 = vld [vmem:[%s1043_s0 + $0x8] sm:$0xff]  ;;  %v159_v14 = vld [vmem:[%s1045_s2 + $0x10] sm:$0xff]  ;;  %v849_v27 = vmov 1966171168  }
   0x3   :  { %v157_v8 = vld [vmem:[%s1045_s2] sm:$0xff]  ;;  %v160_v15 = vld [vmem:[%s1045_s2 + $0x18] sm:$0xff]  ;;  %v162_v21 = vld [vmem:[%s1045_s2 + $0x28] sm:$0xff]  ;;  %v63_v28 = vunpack.c.l.s4 %v849_v27  ;;  %vm56_vm0 = vcmask 261120   ;;  %vm261_vm1 = vcmask 523264   ;;  %vm851_vm2 = vmmov 0  }
   0x4   :  { %v32_v3 = vsub.s32 0, %v31_v1  ;;  %v39_v4 = vsub.s32 1, %v31_v1  ;;  %v759_v10 = vpack.c.bf16 %v158_v9, %v157_v8  ;;  %v763_v17 = vpack.c.bf16 %v160_v15, %v159_v14  ;;  %v161_v20 = vld [vmem:[%s1045_s2 + $0x20] sm:$0xff]  ;;  %v163_v24 = vld [vmem:[%s1045_s2 + $0x30] sm:$0xff]  ;;  %v164_v25 = vld [vmem:[%s1045_s2 + $0x38] sm:$0xff] }
   0x5   :  { %v767_v23 = vpack.c.bf16 %v162_v21, %v161_v20  ;;  %v771_v26 = vpack.c.bf16 %v164_v25, %v163_v24  ;;  %v64_v29 = vunpack.c.0.s8 %v63_v28  ;;  %v563_v20 = vld [vmem:[%s1047_s4 + $0x10] sm:$0xff]  ;;  %v564_v21 = vld [vmem:[%s1047_s4 + $0x18] sm:$0xff]  ;;  %v566_v24 = vld [vmem:[%s1047_s4 + $0x28] sm:$0xff]  ;;  %v852_v25 = vmov 0.0  }
   0x6   :  { %v33_v5 = vrot.slane %v29_v2, %v32_v3  ;;  %v40_v6 = vrot.slane %v29_v2, %v39_v4  ;;  %760 = vmatprep.subr.bf16.mxu0 %v759_v10  ;;  %756 = vmatprep.mubr.msk.f32.mxu1 %vm851_vm2, %v852_v25  ;;  %v567_v27 = vld [vmem:[%s1047_s4 + $0x30] sm:$0xff]  ;;  %v568_v28 = vld [vmem:[%s1047_s4 + $0x38] sm:$0xff]  ;;  %vm539_vm3 = vcmask 784384   ;;  %vm556_vm4 = vcmask 1041409  }
   0x7   :  { %762 = vmatpush3.bf16.msra.mxu0 %v759_v10  ;;  %v928_v30 = vsub.s32 %v64_v29, %v31_v1  ;;  %v785_v29 = vpack.c.bf16 %v568_v28, %v567_v27  ;;  %vm580_vm5 = vcmask 785408   ;;  %vm559_vm6 = vcmask 779264  }
   0x8   :  { %35 = vbcast.lane.b32.xlu0 %v33_v5, 256  ;;  %764 = vmatprep.subr.bf16.mxu0 %v763_v17 }
   0xb   :  { %766 = vmatpush3.bf16.msra.mxu0 %v763_v17  ;;  %v562_v17 = vld [vmem:[%s1047_s4 + $0x8] sm:$0xff] }
   0xc   :  { %42 = vbcast.lane.b32.xlu0 %v40_v6, 256  ;;  %768 = vmatprep.subr.bf16.mxu0 %v767_v23 }
   0xf   :  { %770 = vmatpush3.bf16.msra.mxu0 %v767_v23  ;;  %v565_v23 = vld [vmem:[%s1047_s4 + $0x20] sm:$0xff] }
  0x10   :  { %772 = vmatprep.subr.bf16.mxu0 %v771_v26 }
  0x13   :  { %774 = vmatpush3.bf16.msra.mxu0 %v771_v26  ;;  %v782_v26 = vpack.c.bf16 %v566_v24, %v565_v23 }
  0x7a   :  { %v36_v11 = vpop.permute.xlu0 %35 }
  0x7b   :  { %v44_v12 = vmul.f32 %v36_v11, %v27_v7 }
  0x7d   :  { %v48_v16 = vrot.slane %v44_v12, 1 }
  0x7e   :  { %v43_v18 = vpop.permute.xlu0 %42 }
  0x7f   :  { %v45_v19 = vmul.f32 %v43_v18, %v28_v13  ;;  %50 = vrot.lane.b32.xlu1 %v48_v16, %s848_s14  ;;  %v561_v16 = vld [vmem:[%s1047_s4] sm:$0xff] }
  0x80   :  { %v776_v18 = vpack.c.bf16 %v562_v17, %v561_v16 }
  0x81   :  { %v49_v22 = vrot.slane %v45_v19, 1 }
  0x83   :  { %52 = vrot.lane.b32.xlu1 %v49_v22, %s848_s14  ;;  %v779_v22 = vpack.c.bf16 %v564_v21, %v563_v20 }
  0xf1   :  { %v51_v31 = vpop.permute.xlu1 %50 }
  0xf2   :  { %v57_v32 = vsel %vm56_vm0, %v44_v12, %v51_v31  ;;  %v569_v31 = vld [vmem:[%s1047_s4 + $0x40] sm:$0xff] }
  0xf3   :  { %v61_v33 = vcombine.high %v57_v32, %v57_v32  ;;  %v68_v34 = vrot.slane %v57_v32, %v928_v30  ;;  %v570_v32 = vld [vmem:[%s1047_s4 + $0x48] sm:$0xff] }
  0xf5   :  { %v75_v35 = vrot.slane %v61_v33, %v928_v30  ;;  %v76_v36 = vcombine.high %v68_v34, %v68_v34  ;;  %v53_v37 = vpop.permute.xlu1 %52  ;;  %v84_v38 = vrot.slane %v68_v34, %v928_v30  ;;  %v788_v33 = vpack.c.bf16 %v570_v32, %v569_v31  ;;  %v571_v34 = vld [vmem:[%s1047_s4 + $0x50] sm:$0xff] }
  0xf6   :  { %v58_v39 = vsel %vm56_vm0, %v45_v19, %v53_v37  ;;  %v850_v19 = vmov 0.0|0.0   ;;  %v683_v37 = vld [vmem:[%s1046_s3] ss:$0 sm:$0xff]  ;;  %s853_s3 = smov [#allocation4]  }
  0xf7   :  { %v77_v40 = vcombine.high %v75_v35, %v75_v35  ;;  %v91_v41 = vrot.slane %v75_v35, %v928_v30  ;;  %v98_v42 = vrot.slane %v76_v36, %v928_v30  ;;  %v109_v43 = vcombine.high %v58_v39, %v58_v39  ;;  %775 = vmatprep.subr.bf16.mxu1 %v850_v19  ;;  %v572_v35 = vld [vmem:[%s1047_s4 + $0x58] sm:$0xff]  ;;  %s671_s4 = sshll.u32 %s853_s3, 4  ;;  %s672_s4 = int_to_ptr.vmem [resolvable:$true] %s671_s4 }
  0xf8   :  { %v116_v44 = vrot.slane %v58_v39, %v928_v30  ;;  %777 = vmatpush3.bf16.msra.mxu1 %v776_v18  ;;  %v791_v36 = vpack.c.bf16 %v572_v35, %v571_v34  ;;  %s800_s2 = scalar_lea.vmem %s672_s4, 32  ;;  %p805_p1 = scmp.lt.s32.totalorder %s672_s4, %s672_s4 }
  0xf9   :  { %v105_v45 = vrot.slane %v77_v40, %v928_v30  ;;  %v172_v46 = vcombine.low %v84_v38, %v98_v42  ;;  %v684_v47 = vcombine.high %v84_v38, %v98_v42  ;;  %v107_v48 = vcombine.high %v91_v41, %v91_v41  ;;  %778 = vmatprep.subr.bf16.mxu1 %v850_v19  ;;  %p801_p0 = scmp.ne.s32.totalorder %s672_s4, %s800_s2  ;;  %p806_p2 = scmp.lt.s32.totalorder %s800_s2, %s800_s2 }
  0xfa   :  { %v123_v49 = vrot.slane %v109_v43, %v928_v30  ;;  %v124_v50 = vcombine.high %v116_v44, %v116_v44  ;;  %v132_v51 = vrot.slane %v116_v44, %v928_v30 }
  0xfb   :  { %v174_v52 = vcombine.low %v91_v41, %v105_v45  ;;  %v182_v53 = vrot.slane %v172_v46, %v928_v30  ;;  %v189_v54 = vrot.slane %v684_v47, %v928_v30  ;;  %p807_p3 = por %p806_p2, %p805_p1 }
  0xfc   :  { %v125_v55 = vcombine.high %v123_v49, %v123_v49  ;;  %v139_v56 = vrot.slane %v123_v49, %v928_v30  ;;  %v146_v57 = vrot.slane %v124_v50, %v928_v30  ;;  %v154_v58 = vcombine.high %v132_v51, %v132_v51  ;;  %780 = vmatpush3.bf16.msra.mxu1 %v779_v22 }
  0xfd   :  { %v175_v59 = vcombine.low %v107_v48, %v132_v51  ;;  %v196_v60 = vrot.slane %v174_v52, %v928_v30  ;;  %v204_v2 = vcombine.low %v182_v53, %v189_v54  ;;  %781 = vmatprep.subr.bf16.mxu1 %v850_v19  ;;  %p808_p4 = pnand %p807_p3, %p801_p0 }
  0xfe   :  { %v153_v61 = vrot.slane %v125_v55, %v928_v30  ;;  %v155_v62 = vcombine.high %v139_v56, %v139_v56  ;;  %v156_v63 = vcombine.high %v146_v57, %v146_v57  ;;  %v221_v0 = vcombine.low %v146_v57, %v154_v58 }
  0xff   :  { %v203_v1 = vrot.slane %v175_v59, %v928_v30  ;;  %v212_v9 = vrot.slane %v204_v2, %v928_v30 }
 0x100   :  { %v222_v3 = vcombine.low %v156_v63, %v139_v56  ;;  %v223_v4 = vcombine.low %v153_v61, %v155_v62  ;;  %v230_v6 = vrot.slane %v221_v0, %v928_v30  ;;  %783 = vmatpush3.bf16.msra.mxu1 %v782_v26 }
 0x101   :  { %v205_v5 = vcombine.low %v196_v60, %v203_v1  ;;  %784 = vmatprep.subr.bf16.mxu1 %v850_v19 }
 0x102   :  { %v237_v7 = vrot.slane %v222_v3, %v928_v30  ;;  %v244_v8 = vrot.slane %v223_v4, %v928_v30 }
 0x103   :  { %v219_v10 = vrot.slane %v205_v5, %v928_v30 }
 0x104   :  { %v245_v11 = vcombine.low %v230_v6, %v237_v7  ;;  %v259_v14 = vrot.slane %v244_v8, %v928_v30  ;;  %786 = vmatpush3.bf16.msra.mxu1 %v785_v29 }
 0x105   :  { %v220_v12 = vcombine.low %v212_v9, %v219_v10  ;;  %787 = vmatprep.subr.bf16.mxu1 %v850_v19 }
 0x106   :  { %v252_v13 = vrot.slane %v245_v11, %v928_v30 }
 0x107   :  { %729 = vmatprep.mubr.msk.f32.mxu0 %vm261_vm1, %v220_v12 }
 0x108   :  { %v260_v15 = vcombine.low %v252_v13, %v259_v14  ;;  %789 = vmatpush3.bf16.msra.mxu1 %v788_v33 }
 0x109   :  { %790 = vmatprep.subr.bf16.mxu1 %v850_v19 }
 0x10a   :  { %730 = vmatmul.mubr.msk.f32.vlgmr.msra.gmra.mrb[0].mxu0 %vm261_vm1, %v260_v15 }
 0x10c   :  { %792 = vmatpush3.bf16.msra.mxu1 %v791_v36 }
 0x1dd   :  { %v731_v38 = vpop.f32.mrb[0].mxu0 }
 0x1de   :  { %v338_v39 = vadd.f32 %v731_v38, %v683_v37  ;;  %v332_v40 = vpop.f32.mrb[1].mxu0 }
 0x1df   :  { %v333_v41 = vadd.f32 %v683_v37, %v332_v40 }
 0x1e0   :  { %v342_v42 = vmax.f32 %v338_v39, 0.0 }
 0x1e1   :  { %v341_v43 = vmax.f32 %v333_v41, 0.0 }
 0x1e2   :  { %v394_v44 = vcombine.high %v342_v42, %v342_v42  ;;  %v401_v45 = vrot.slane %v342_v42, %v928_v30 }
 0x1e3   :  { %v345_v46 = vcombine.high %v341_v43, %v341_v43  ;;  %v352_v47 = vrot.slane %v341_v43, %v928_v30 }
 0x1e4   :  { %v408_v48 = vrot.slane %v394_v44, %v928_v30  ;;  %v409_v49 = vcombine.high %v401_v45, %v401_v45  ;;  %v417_v50 = vrot.slane %v401_v45, %v928_v30 }
 0x1e5   :  { %v359_v51 = vrot.slane %v345_v46, %v928_v30  ;;  %v360_v52 = vcombine.high %v352_v47, %v352_v47  ;;  %v368_v57 = vrot.slane %v352_v47, %v928_v30 }
 0x1e6   :  { %v410_v53 = vcombine.high %v408_v48, %v408_v48  ;;  %v431_v54 = vrot.slane %v409_v49, %v928_v30  ;;  %v439_v55 = vcombine.high %v417_v50, %v417_v50  ;;  %v424_v60 = vrot.slane %v408_v48, %v928_v30 }
 0x1e7   :  { %v361_v56 = vcombine.high %v359_v51, %v359_v51  ;;  %v375_v58 = vrot.slane %v359_v51, %v928_v30  ;;  %v382_v59 = vrot.slane %v360_v52, %v928_v30 }
 0x1e8   :  { %v438_v61 = vrot.slane %v410_v53, %v928_v30  ;;  %v440_v62 = vcombine.high %v431_v54, %v431_v54  ;;  %v490_v3 = vcombine.low %v431_v54, %v439_v55 }
 0x1e9   :  { %v389_v63 = vrot.slane %v361_v56, %v928_v30  ;;  %v391_v0 = vcombine.high %v375_v58, %v375_v58  ;;  %v441_v1 = vcombine.low %v368_v57, %v382_v59  ;;  %v687_v2 = vcombine.high %v368_v57, %v382_v59 }
 0x1ea   :  { %v491_v4 = vcombine.low %v440_v62, %v424_v60  ;;  %v519_v10 = vrot.slane %v438_v61, %v928_v30  ;;  %v505_v15 = vrot.slane %v490_v3, %v928_v30 }
 0x1eb   :  { %v393_v5 = vcombine.high %v389_v63, %v389_v63  ;;  %v443_v6 = vcombine.low %v375_v58, %v389_v63  ;;  %v450_v7 = vrot.slane %v441_v1, %v928_v30  ;;  %v457_v8 = vrot.slane %v687_v2, %v928_v30 }
 0x1ec   :  { %v512_v9 = vrot.slane %v491_v4, %v928_v30  ;;  %v471_v12 = vrot.slane %v391_v0, %v928_v30 }
 0x1ed   :  { %v464_v11 = vrot.slane %v443_v6, %v928_v30  ;;  %v472_v13 = vcombine.low %v450_v7, %v457_v8  ;;  %v489_v14 = vcombine.low %v393_v5, %v417_v50 }
 0x1ee   :  { %v521_v16 = vcombine.low %v512_v9, %v519_v10 }
 0x1ef   :  { %v473_v17 = vcombine.low %v464_v11, %v471_v12  ;;  %v498_v18 = vrot.slane %v489_v14, %v928_v30  ;;  %v480_v19 = vrot.slane %v472_v13, %v928_v30 }
 0x1f0   :  { %v535_v22 = vrot.slane %v521_v16, %v928_v30 }
 0x1f1   :  { %v487_v20 = vrot.slane %v473_v17, %v928_v30  ;;  %v520_v21 = vcombine.low %v498_v18, %v505_v15 }
 0x1f3   :  { %v488_v23 = vcombine.low %v480_v19, %v487_v20  ;;  %v528_v24 = vrot.slane %v520_v21, %v928_v30 }
 0x1f5   :  { %v536_v25 = vcombine.low %v528_v24, %v535_v22  ;;  %v540_v26 = vsel %vm539_vm3, %v488_v23, -inf }
 0x1f6   :  { %v541_v27 = vrot.slane %v540_v26, 4 }
 0x1f7   :  { %v547_v28 = vsel %vm539_vm3, %v536_v25, -inf }
 0x1f8   :  { %v542_v29 = vmax.f32 %v540_v26, %v541_v27  ;;  %v548_v31 = vrot.slane %v547_v28, 4 }
 0x1fa   :  { %v543_v32 = vrot.slane %v542_v29, 2  ;;  %v549_v33 = vmax.f32 %v547_v28, %v548_v31 }
 0x1fc   :  { %v544_v34 = vmax.f32 %v542_v29, %v543_v32  ;;  %v550_v35 = vrot.slane %v549_v33, 2 }
 0x1fe   :  { %v545_v36 = vrot.slane %v544_v34, 1  ;;  %v551_v37 = vmax.f32 %v549_v33, %v550_v35 }
 0x200   :  { %v552_v38 = vrot.slane %v551_v37, 1  ;;  %v546_v39 = vmax.f32 %v544_v34, %v545_v36 }
 0x202   :  { %v553_v40 = vmax.f32 %v551_v37, %v552_v38 }
 0x204   :  { %v557_v41 = vsel %vm556_vm4, %v553_v40, %v546_v39 }
 0x205   :  { %757 = vmatmul.mubr.msk.f32.vlgmr.msra.gmra.mrb[0].mxu1 %vm580_vm5, %v557_v41  ;;  %560 = vst.msk [vmem:[#allocation4] sm:$0x3] %vm559_vm6, %v557_v41 }
 0x206   :  { %811 = shalt.err (!%p808_p4)
}
 0x207   :  { %s812_s24 = scalar_lea.hbm %s1050_s7, 32 }
 0x208   :  { %p813_p5 = scmp.ne.s32.totalorder %s1050_s7, %s812_s24  ;;  %p816_p6 = scmp.lt.u32.totalorder %s812_s24, %s1050_s7 }
 0x20a   :  { %p818_p7 = pnand %p816_p6, %p813_p5 }
 0x20c   :  { %821 = shalt.err (!%p818_p7)
}
 0x20d   :  { %674 = dma.vmem_to_hbm [thread:$0]  %s672_s4, 32, %s1050_s7, [#allocation5]   ;;  %v688_v30 = vld [vmem:[%s1048_s5] ss:$0 sm:$0xff]  ;;  %vm653_vm7 = vcmask 254976  }
 0x20e   :  { %s854_s9 = smov [#allocation2]  }
 0x20f   :  { %s661_s10 = sshll.u32 %s854_s9, 4  ;;  %s662_s10 = int_to_ptr.vmem [resolvable:$true] %s661_s10 }
 0x210   :  { %s822_s11 = scalar_lea.vmem %s662_s10, 32  ;;  %p827_p9 = scmp.lt.s32.totalorder %s662_s10, %s662_s10 }
 0x211   :  { %p823_p8 = scmp.ne.s32.totalorder %s662_s10, %s822_s11  ;;  %p828_p10 = scmp.lt.s32.totalorder %s822_s11, %s822_s11 }
 0x213   :  { %p829_p11 = por %p828_p10, %p827_p9 }
 0x215   :  { %p830_p12 = pnand %p829_p11, %p823_p8 }
 0x2d8   :  { %v649_v42 = vpop.f32.mrb[0].mxu1 }
 0x2d9   :  { %v650_v43 = vadd.f32 %v688_v30, %v649_v42  ;;  %v758_v44 = vpop.f32.mrb[1].mxu1 }
 0x2db   :  { %654 = vst.msk [vmem:[#allocation2] sm:$0x3] %vm653_vm7, %v650_v43 }
 0x2dc   :  { %833 = shalt.err (!%p830_p12)
}
 0x2dd   :  { %s834_s13 = scalar_lea.hbm %s1049_s6, 32 }
 0x2de   :  { %p835_p13 = scmp.ne.s32.totalorder %s1049_s6, %s834_s13  ;;  %p838_p0 = scmp.lt.u32.totalorder %s834_s13, %s1049_s6 }
 0x2e0   :  { %p840_p1 = pnand %p838_p0, %p835_p13 }
 0x2e2   :  { %843 = shalt.err (!%p840_p1)
}
 0x2e3   :  { %664 = dma.vmem_to_hbm [thread:$0]  %s662_s10, 32, %s1049_s6, [#allocation3]  }
 0x2e4   :  { %844 = dma.done.wait [#allocation3], 32  }
 0x2e5   :  { %845 = vsyncadd [#allocation3], 4294967264 }
 0x2e6   :  { %846 = dma.done.wait [#allocation5], 32  }
 0x2e7   :  { %847 = vsyncadd [#allocation5], 4294967264 }
 0x2e8   :  { %681 = vsyncpa [#allocation3], 1 }
 0x2e9   :  { %682 = vsyncpa [#allocation5], 1 }

</bundles_post_ra>
